<compile_context>
chip_gen: v5e
topology: v5e:2x2
jax: 0.10.0
libtpu: 0.0.40
codegen_flags: <defaults>
</compile_context>

<pallas_src>
import functools
import math

import jax
import jax.numpy as jnp
from jax.experimental import pallas as pl
from jax.experimental.pallas import tpu as pltpu

_LANES = 128
_ROW_TILE = 128  # max node-row tile; shrunk to the (8-aligned) N for tiny graphs


def _round_up(a, b):
    return (a + b - 1) // b * b


def _gcn_fused_kernel(adj_ref, x_ref, w1_ref, w2_ref, o_ref,
                      s1_ref, h_ref, s2_ref, *, out_dim):
    """Fused 2-layer GCN.

    grid = (2, J):  phase 0 -> h = relu(adj @ (x @ W1))   (row tile j per step)
                    phase 1 -> log_softmax(adj @ (h @ W2)) (row tile j per step)
    adj_ref : (TM, Np)  bf16  row tile of adjacency
    x_ref   : (Np, F)   bf16  full node features (resident)
    w1_ref  : (F, HP)   bf16  layer-1 weights (hidden zero-padded to 128)
    w2_ref  : (HP, OP)  bf16  layer-2 weights (out zero-padded to 128)
    o_ref   : (TM, OP)  f32   output row tile
    s1_ref  : (Np, HP)  bf16  scratch: x @ W1
    h_ref   : (Np, HP)  f32   scratch: relu(adj @ s1)
    s2_ref  : (Np, OP)  bf16  scratch: h @ W2
    """
    phase = pl.program_id(0)
    j = pl.program_id(1)
    tm = adj_ref.shape[0]

    # ---------------- phase 0 : layer 1 ----------------
    @pl.when((phase == 0) & (j == 0))
    def _():
        # support1 = x @ W1   (computed once, kept resident in VMEM)
        s1 = jnp.dot(x_ref[...], w1_ref[...], preferred_element_type=jnp.float32)
        s1_ref[...] = s1.astype(s1_ref.dtype)

    @pl.when(phase == 0)
    def _():
        # h[row tile j] = relu(adj[row tile j, :] @ support1)
        hj = jnp.dot(adj_ref[...], s1_ref[...], preferred_element_type=jnp.float32)
        row0 = pl.multiple_of(j * tm, tm)
        h_ref[pl.ds(row0, tm), :] = jnp.maximum(hj, 0.0)
        # The output block is written back every grid step; keep phase-0
        # writebacks deterministic (phase 1 overwrites with the real values).
        o_ref[...] = jnp.zeros_like(o_ref)

    # ---------------- phase 1 : layer 2 + log_softmax ----------------
    @pl.when((phase == 1) & (j == 0))
    def _():
        # support2 = h @ W2   (torch order: x @ W before adj @ support)
        s2 = jnp.dot(h_ref[...].astype(jnp.bfloat16), w2_ref[...],
                     preferred_element_type=jnp.float32)
        s2_ref[...] = s2.astype(s2_ref.dtype)

    @pl.when(phase == 1)
    def _():
        out = jnp.dot(adj_ref[...], s2_ref[...], preferred_element_type=jnp.float32)
        # Mask the zero-padded feature lanes before the row-wise log_softmax.
        col = jax.lax.broadcasted_iota(jnp.int32, out.shape, 1)
        out = jnp.where(col < out_dim, out, -jnp.inf)
        m = jnp.max(out, axis=1, keepdims=True)
        shifted = out - m
        lse = jnp.log(jnp.sum(jnp.exp(shifted), axis=1, keepdims=True))
        o_ref[...] = shifted - lse


def gcn_forward(adj, x, w1, w2):
    """y = log_softmax(adj @ relu(adj @ x @ w1) @ w2, axis=1) via one Pallas call."""
    n, f = x.shape
    hidden = w1.shape[1]
    out_dim = w2.shape[1]

    hp = _round_up(hidden, _LANES)   # lane-dense hidden width
    op = _round_up(out_dim, _LANES)  # lane-dense output width

    n_pad = _round_up(n, 8)
    if n_pad <= _ROW_TILE:
        tm = n_pad
    else:
        tm = _ROW_TILE
        n_pad = _round_up(n_pad, tm)
    j_tiles = n_pad // tm

    # Zero-pad to lane/sublane friendly shapes and cast MXU inputs to bf16
    # (zero padding is exact: padded rows/cols contribute nothing).
    adj_p = jnp.zeros((n_pad, n_pad), jnp.bfloat16).at[:n, :n].set(adj.astype(jnp.bfloat16))
    x_p = jnp.zeros((n_pad, f), jnp.bfloat16).at[:n, :].set(x.astype(jnp.bfloat16))
    w1_p = jnp.zeros((f, hp), jnp.bfloat16).at[:, :hidden].set(w1.astype(jnp.bfloat16))
    w2_p = jnp.zeros((hp, op), jnp.bfloat16).at[:hidden, :out_dim].set(w2.astype(jnp.bfloat16))

    flops = (2 * n_pad * f * hp          # x @ W1
             + 2 * n_pad * n_pad * hp    # adj @ s1
             + 2 * n_pad * hp * op       # h @ W2
             + 2 * n_pad * n_pad * op)   # adj @ s2
    bytes_accessed = 2 * (adj_p.size + x_p.size + w1_p.size + w2_p.size) + 4 * n_pad * op

    kernel = functools.partial(_gcn_fused_kernel, out_dim=out_dim)

    y_pad = pl.pallas_call(
        kernel,
        out_shape=jax.ShapeDtypeStruct((n_pad, op), jnp.float32),
        grid_spec=pltpu.PrefetchScalarGridSpec(
            num_scalar_prefetch=0,
            grid=(2, j_tiles),  # (phase, node-row tile); last axis fastest
            in_specs=[
                pl.BlockSpec((tm, n_pad), lambda p, j: (j, 0)),   # adj row tile
                pl.BlockSpec((n_pad, f), lambda p, j: (0, 0)),    # x (full, resident)
                pl.BlockSpec((f, hp), lambda p, j: (0, 0)),       # W1 (full, resident)
                pl.BlockSpec((hp, op), lambda p, j: (0, 0)),      # W2 (full, resident)
            ],
            out_specs=pl.BlockSpec((tm, op), lambda p, j: (j, 0)),
            scratch_shapes=[
                pltpu.VMEM((n_pad, hp), jnp.bfloat16),   # s1 = x @ W1
                pltpu.VMEM((n_pad, hp), jnp.float32),    # h  = relu(adj @ s1)
                pltpu.VMEM((n_pad, op), jnp.bfloat16),   # s2 = h @ W2
            ],
        ),
        compiler_params=pltpu.CompilerParams(
            # phase 1 depends on every phase-0 row tile via shared scratch,
            # so neither grid axis may be megacore-parallel.
            dimension_semantics=("arbitrary", "arbitrary"),
        ),
        cost_estimate=pl.CostEstimate(
            flops=int(flops),
            transcendentals=int(n_pad * (op + 1)),
            bytes_accessed=int(bytes_accessed),
        ),
    )(adj_p, x_p, w1_p, w2_p)

    # TODO(synk): nn.Dropout omitted (identity; this is the inference forward).
    return y_pad[:n, :out_dim]


def gcn_reference(adj, x, w1, w2):
    """Pure-JAX reference with the same bf16-input / f32-accumulate numerics."""
    ab = adj.astype(jnp.bfloat16)
    s1 = jnp.dot(x.astype(jnp.bfloat16), w1.astype(jnp.bfloat16),
                 preferred_element_type=jnp.float32)
    h = jnp.maximum(jnp.dot(ab, s1.astype(jnp.bfloat16),
                            preferred_element_type=jnp.float32), 0.0)
    s2 = jnp.dot(h.astype(jnp.bfloat16), w2.astype(jnp.bfloat16),
                 preferred_element_type=jnp.float32)
    out = jnp.dot(ab, s2.astype(jnp.bfloat16), preferred_element_type=jnp.float32)
    return jax.nn.log_softmax(out, axis=1)


def init_gcn_params(key, input_dim, hidden_dim, output_dim):
    # Matches GCNLayer.reset_parameters: std = sqrt(weights.size(1)),
    # weights ~ U(-std, std). (Yes, sqrt of the *output* dim, as in the ref.)
    k1, k2 = jax.random.split(key)
    std1 = math.sqrt(hidden_dim)
    std2 = math.sqrt(output_dim)
    w1 = jax.random.uniform(k1, (input_dim, hidden_dim), jnp.float32,
                            minval=-std1, maxval=std1)
    w2 = jax.random.uniform(k2, (hidden_dim, output_dim), jnp.float32,
                            minval=-std2, maxval=std2)
    return w1, w2


if __name__ == "__main__":
    key = jax.random.PRNGKey(0)
    k_adj, k_x, k_w = jax.random.split(key, 3)

    N = 8            # number of graph nodes
    INPUT_DIM = 16
    HIDDEN_DIM = 32
    OUTPUT_DIM = 8

    # Symmetric, row-normalized adjacency (deterministic).
    a = jax.random.uniform(k_adj, (N, N), jnp.float32)
    adj = (a + a.T) * 0.5 + jnp.eye(N, dtype=jnp.float32)
    adj = adj / jnp.sum(adj, axis=1, keepdims=True)

    x = jax.random.normal(k_x, (N, INPUT_DIM), jnp.float32)
    w1, w2 = init_gcn_params(k_w, INPUT_DIM, HIDDEN_DIM, OUTPUT_DIM)

    y = gcn_forward(adj, x, w1, w2)
    y = jax.block_until_ready(y)

    y_ref = gcn_reference(adj, x, w1, w2)

    # Sanity: shape, finiteness, log_softmax rows sum to 1 in prob space,
    # and agreement with a bf16-matched pure-JAX reference.
    row_sums = jnp.sum(jnp.exp(y), axis=1)
    assert y.shape == (N, OUTPUT_DIM)
    assert bool(jnp.all(jnp.isfinite(y)))
    assert bool(jnp.allclose(row_sums, 1.0, atol=1e-4))
    assert bool(jnp.allclose(y, y_ref, atol=5e-2, rtol=5e-2))

    print("KERNEL_OK")
</pallas_src>

<mosaic_0001>
module attributes {stable_mosaic.version = 11 : i64} {
  func.func @_gcn_fused_kernel(%arg0: i32, %arg1: i32, %arg2: memref<8x8xbf16, #tpu.memory_space<vmem>>, %arg3: memref<8x16xbf16, #tpu.memory_space<vmem>>, %arg4: memref<16x128xbf16, #tpu.memory_space<vmem>>, %arg5: memref<128x128xbf16, #tpu.memory_space<vmem>>, %arg6: memref<8x128xf32, #tpu.memory_space<vmem>>, %arg7: memref<8x128xbf16, #tpu.memory_space<vmem>>, %arg8: memref<8x128xf32, #tpu.memory_space<vmem>>, %arg9: memref<8x128xbf16, #tpu.memory_space<vmem>>) attributes {dimension_semantics = [#tpu.dimension_semantics<arbitrary>, #tpu.dimension_semantics<arbitrary>], iteration_bounds = array<i64: 2, 1>, scalar_prefetch = 0 : i64, scratch_operands = 3 : i64, tpu.core_type = #tpu.core_type<tc>, window_params = [{transform_indices = @transform_0, window_bounds = array<i64: 8, 8>}, {pipeline_mode = #tpu.pipeline_mode<synchronous>, transform_indices = @transform_1, window_bounds = array<i64: 8, 16>}, {pipeline_mode = #tpu.pipeline_mode<synchronous>, transform_indices = @transform_2, window_bounds = array<i64: 16, 128>}, {pipeline_mode = #tpu.pipeline_mode<synchronous>, transform_indices = @transform_3, window_bounds = array<i64: 128, 128>}, {transform_indices = @transform_4, window_bounds = array<i64: 8, 128>}]} {
    %c0_i32 = arith.constant 0 : i32
    %0 = arith.cmpi eq, %arg0, %c0_i32 : i32
    %c0_i32_0 = arith.constant 0 : i32
    %1 = arith.cmpi eq, %arg1, %c0_i32_0 : i32
    %2 = arith.andi %0, %1 : i1
    %3 = arith.extui %2 : i1 to i32
    %c0_i32_1 = arith.constant 0 : i32
    %4 = arith.cmpi ne, %3, %c0_i32_1 : i32
    scf.if %4 {
      %c0 = arith.constant 0 : index
      %c0_8 = arith.constant 0 : index
      %16 = vector.load %arg3[%c0, %c0_8] : memref<8x16xbf16, #tpu.memory_space<vmem>>, vector<8x16xbf16>
      %c0_9 = arith.constant 0 : index
      %c0_10 = arith.constant 0 : index
      %17 = vector.load %arg4[%c0_9, %c0_10] : memref<16x128xbf16, #tpu.memory_space<vmem>>, vector<16x128xbf16>
      %cst = arith.constant dense<0.000000e+00> : vector<8x128xf32>
      %18 = tpu.matmul %16, %17, %cst {dimension_numbers = #tpu.dot_dimension_numbers<[1], [0], [0], [1], [0, 0, 1, 1], [], []>} : vector<8x16xbf16>, vector<16x128xbf16>, vector<8x128xf32> -> vector<8x128xf32>
      %19 = arith.truncf %18 : vector<8x128xf32> to vector<8x128xbf16>
      %c0_11 = arith.constant 0 : index
      %c0_12 = arith.constant 0 : index
      %20 = vector.load %arg7[%c0_11, %c0_12] : memref<8x128xbf16, #tpu.memory_space<vmem>>, vector<8x128xbf16>
      tpu.vector_store %arg7[%c0_11, %c0_12], %19 {strides = array<i32>} : memref<8x128xbf16, #tpu.memory_space<vmem>>, vector<8x128xbf16>,
    } else {
    }
    %c0_i32_2 = arith.constant 0 : i32
    %5 = arith.cmpi eq, %arg0, %c0_i32_2 : i32
    %6 = arith.extui %5 : i1 to i32
    %c0_i32_3 = arith.constant 0 : i32
    %7 = arith.cmpi ne, %6, %c0_i32_3 : i32
    scf.if %7 {
      %c0 = arith.constant 0 : index
      %c0_8 = arith.constant 0 : index
      %16 = vector.load %arg2[%c0, %c0_8] : memref<8x8xbf16, #tpu.memory_space<vmem>>, vector<8x8xbf16>
      %c0_9 = arith.constant 0 : index
      %c0_10 = arith.constant 0 : index
      %17 = vector.load %arg7[%c0_9, %c0_10] : memref<8x128xbf16, #tpu.memory_space<vmem>>, vector<8x128xbf16>
      %cst = arith.constant dense<0.000000e+00> : vector<8x128xf32>
      %18 = tpu.matmul %16, %17, %cst {dimension_numbers = #tpu.dot_dimension_numbers<[1], [0], [0], [1], [0, 0, 1, 1], [], []>} : vector<8x8xbf16>, vector<8x128xbf16>, vector<8x128xf32> -> vector<8x128xf32>
      %c8_i32 = arith.constant 8 : i32
      %19 = arith.muli %arg1, %c8_i32 : i32
      %20 = tpu.assume_multiple %19, 8 : i32
      %cst_11 = arith.constant 0.000000e+00 : f32
      %21 = vector.broadcast %cst_11 : f32 to vector<8x128xf32>
      %22 = arith.maximumf %18, %21 : vector<8x128xf32>
      %23 = arith.index_cast %20 : i32 to index
      %c0_12 = arith.constant 0 : index
      %24 = vector.load %arg8[%23, %c0_12] : memref<8x128xf32, #tpu.memory_space<vmem>>, vector<8x128xf32>
      tpu.vector_store %arg8[%23, %c0_12], %22 {strides = array<i32>} : memref<8x128xf32, #tpu.memory_space<vmem>>, vector<8x128xf32>,
      %cst_13 = arith.constant 0.000000e+00 : f32
      %25 = vector.broadcast %cst_13 : f32 to vector<8x128xf32>
      %c0_14 = arith.constant 0 : index
      %c0_15 = arith.constant 0 : index
      %26 = vector.load %arg6[%c0_14, %c0_15] : memref<8x128xf32, #tpu.memory_space<vmem>>, vector<8x128xf32>
      tpu.vector_store %arg6[%c0_14, %c0_15], %25 {strides = array<i32>} : memref<8x128xf32, #tpu.memory_space<vmem>>, vector<8x128xf32>,
    } else {
    }
    %c1_i32 = arith.constant 1 : i32
    %8 = arith.cmpi eq, %arg0, %c1_i32 : i32
    %c0_i32_4 = arith.constant 0 : i32
    %9 = arith.cmpi eq, %arg1, %c0_i32_4 : i32
    %10 = arith.andi %8, %9 : i1
    %11 = arith.extui %10 : i1 to i32
    %c0_i32_5 = arith.constant 0 : i32
    %12 = arith.cmpi ne, %11, %c0_i32_5 : i32
    scf.if %12 {
      %c0 = arith.constant 0 : index
      %c0_8 = arith.constant 0 : index
      %16 = vector.load %arg8[%c0, %c0_8] : memref<8x128xf32, #tpu.memory_space<vmem>>, vector<8x128xf32>
      %17 = arith.truncf %16 : vector<8x128xf32> to vector<8x128xbf16>
      %c0_9 = arith.constant 0 : index
      %c0_10 = arith.constant 0 : index
      %18 = vector.load %arg5[%c0_9, %c0_10] : memref<128x128xbf16, #tpu.memory_space<vmem>>, vector<128x128xbf16>
      %cst = arith.constant dense<0.000000e+00> : vector<8x128xf32>
      %19 = tpu.matmul %17, %18, %cst {dimension_numbers = #tpu.dot_dimension_numbers<[1], [0], [0], [1], [0, 0, 1, 1], [], []>} : vector<8x128xbf16>, vector<128x128xbf16>, vector<8x128xf32> -> vector<8x128xf32>
      %20 = arith.truncf %19 : vector<8x128xf32> to vector<8x128xbf16>
      %c0_11 = arith.constant 0 : index
      %c0_12 = arith.constant 0 : index
      %21 = vector.load %arg9[%c0_11, %c0_12] : memref<8x128xbf16, #tpu.memory_space<vmem>>, vector<8x128xbf16>
      tpu.vector_store %arg9[%c0_11, %c0_12], %20 {strides = array<i32>} : memref<8x128xbf16, #tpu.memory_space<vmem>>, vector<8x128xbf16>,
    } else {
    }
    %c1_i32_6 = arith.constant 1 : i32
    %13 = arith.cmpi eq, %arg0, %c1_i32_6 : i32
    %14 = arith.extui %13 : i1 to i32
    %c0_i32_7 = arith.constant 0 : i32
    %15 = arith.cmpi ne, %14, %c0_i32_7 : i32
    scf.if %15 {
      %c0 = arith.constant 0 : index
      %c0_8 = arith.constant 0 : index
      %16 = vector.load %arg2[%c0, %c0_8] : memref<8x8xbf16, #tpu.memory_space<vmem>>, vector<8x8xbf16>
      %c0_9 = arith.constant 0 : index
      %c0_10 = arith.constant 0 : index
      %17 = vector.load %arg9[%c0_9, %c0_10] : memref<8x128xbf16, #tpu.memory_space<vmem>>, vector<8x128xbf16>
      %cst = arith.constant dense<0.000000e+00> : vector<8x128xf32>
      %18 = tpu.matmul %16, %17, %cst {dimension_numbers = #tpu.dot_dimension_numbers<[1], [0], [0], [1], [0, 0, 1, 1], [], []>} : vector<8x8xbf16>, vector<8x128xbf16>, vector<8x128xf32> -> vector<8x128xf32>
      %19 = tpu.iota {dimensions = array<i32: 1>} : vector<8x128xi32>
      %c8_i32 = arith.constant 8 : i32
      %20 = vector.broadcast %c8_i32 : i32 to vector<8x128xi32>
      %21 = arith.cmpi slt, %19, %20 : vector<8x128xi32>
      %cst_11 = arith.constant 0xFF800000 : f32
      %22 = vector.broadcast %cst_11 : f32 to vector<8x128xf32>
      %23 = arith.select %21, %18, %22 : vector<8x128xi1>, vector<8x128xf32>
      %cst_12 = arith.constant dense<0xFF800000> : vector<8xf32>
      %24 = vector.multi_reduction <maximumf>, %23, %cst_12 [1] : vector<8x128xf32> to vector<8xf32>
      %25 = vector.shape_cast %24 : vector<8xf32> to vector<8x1xf32>
      %26 = vector.broadcast %25 : vector<8x1xf32> to vector<8x128xf32>
      %27 = arith.subf %23, %26 : vector<8x128xf32>
      %28 = math.exp %27 : vector<8x128xf32>
      %cst_13 = arith.constant dense<0.000000e+00> : vector<8xf32>
      %29 = vector.multi_reduction <add>, %28, %cst_13 [1] : vector<8x128xf32> to vector<8xf32>
      %30 = vector.shape_cast %29 : vector<8xf32> to vector<8x1xf32>
      %31 = math.log %30 : vector<8x1xf32>
      %32 = vector.broadcast %31 : vector<8x1xf32> to vector<8x128xf32>
      %33 = arith.subf %27, %32 : vector<8x128xf32>
      %c0_14 = arith.constant 0 : index
      %c0_15 = arith.constant 0 : index
      %34 = vector.load %arg6[%c0_14, %c0_15] : memref<8x128xf32, #tpu.memory_space<vmem>>, vector<8x128xf32>
      tpu.vector_store %arg6[%c0_14, %c0_15], %33 {strides = array<i32>} : memref<8x128xf32, #tpu.memory_space<vmem>>, vector<8x128xf32>,
    } else {
    }
    return
  }
  func.func @transform_0(%arg0: i32, %arg1: i32) -> (i32, i32) {
    %c0_i32 = arith.constant 0 : i32
    %c0_i32_0 = arith.constant 0 : i32
    return %arg1, %c0_i32 : i32, i32
  }
  func.func @transform_1(%arg0: i32, %arg1: i32) -> (i32, i32) {
    %c0_i32 = arith.constant 0 : i32
    %c0_i32_0 = arith.constant 0 : i32
    %c0_i32_1 = arith.constant 0 : i32
    return %c0_i32, %c0_i32_0 : i32, i32
  }
  func.func @transform_2(%arg0: i32, %arg1: i32) -> (i32, i32) {
    %c0_i32 = arith.constant 0 : i32
    %c0_i32_0 = arith.constant 0 : i32
    %c0_i32_1 = arith.constant 0 : i32
    return %c0_i32, %c0_i32_0 : i32, i32
  }
  func.func @transform_3(%arg0: i32, %arg1: i32) -> (i32, i32) {
    %c0_i32 = arith.constant 0 : i32
    %c0_i32_0 = arith.constant 0 : i32
    %c0_i32_1 = arith.constant 0 : i32
    return %c0_i32, %c0_i32_0 : i32, i32
  }
  func.func @transform_4(%arg0: i32, %arg1: i32) -> (i32, i32) {
    %c0_i32 = arith.constant 0 : i32
    %c0_i32_0 = arith.constant 0 : i32
    return %arg1, %c0_i32 : i32, i32
  }
}

</mosaic_0001>

<bundles_post_ra>
// kernel: tpu_custom_call.1
= control target key start
LH: loop header
LB: loop body
LE: loop exit
PB: predicated region body
PF: predicated region fallthrough
CT: control target
= control target key end

     0   :  { %9 = vsyncpa [#allocation6], 0  ;;  %s998_s0 = inlined_call_operand.hbm [shape: bf16[8,8], index: 0, kind: input, shape index: {}]   ;;  %s999_s1 = inlined_call_operand.hbm [shape: bf16[8,16], index: 1, kind: input, shape index: {}]   ;;  %s1000_s2 = inlined_call_operand.hbm [shape: bf16[16,128], index: 2, kind: input, shape index: {}]   ;;  %s1001_s3 = inlined_call_operand.hbm [shape: bf16[128,128], index: 3, kind: input, shape index: {}]   ;;  %s1002_s4 = inlined_call_operand.hbm [shape: f32[8,128], index: 4, kind: output, shape index: {}]  }
   0x1   :  { %10 = vsyncpa [#allocation9], 0 }
   0x2   :  { %11 = vsyncpa [#allocation12], 0 }
   0x3   :  { %12 = vsyncpa [#allocation7], 0  ;;  %s907_s15 = smov 0   ;;  %s909_s16 = smov 0  }
   0x4   :  { %s911_s17 = smov 0  }
   0x5 LB: > { %s176_s20 = sshll.u32 %s999_s1, 4  ;;  %s538_s21 = sadd.s32 4294967295, %s872_s17   ;;  %s872_s17 = sphi %s911_s17, %s18_s17   ;;  %s868_s16 = sphi %s909_s16, %s1007_s16   ;;  %s864_s15 = sphi %s907_s15, %s1006_s15   ;;  %s177_s20 = int_to_ptr.hbm [resolvable:$true] %s176_s20 }
   0x6   : > { %p539_p0 = scmp.ge.s32.totalorder %s872_s17, 1  ;;  %p150_p1 = scmp.lt.s32.totalorder %s872_s17, 3 }
   0x7   : > { %p930_p2 = scmp.eq.s32.totalorder %s538_s21, 0  ;;  %s874_s24 = smov [#allocation8]  }
   0x8   : > { %p934_p3 = pnand %p539_p0, %p150_p1  ;;  %s178_s25 = sshll.u32 %s874_s24, 4  ;;  %s179_s25 = int_to_ptr.vmem [resolvable:$true] %s178_s25 }
   0x9   : > { %s30_s27 = sadd.s32 1, %s868_s16  ;;  %s164_s30 = sshll.u32 %s998_s0, 4  ;;  %s165_s30 = int_to_ptr.hbm [resolvable:$true] %s164_s30 }
   0xa   : > { %p627_p4 = pneg %p934_p3  ;;  %p32_p6 = scmp.ge.s32.totalorder %s30_s27, 2 }
   0xb   : > { %s187_s7 = sshll.u32 %s1000_s2, 4  ;;  %s875_s8 = smov [#allocation5]   ;;  %s188_s7 = int_to_ptr.hbm [resolvable:$true] %s187_s7 }
   0xc   : > { %p942_p5 = pnand %p930_p2, %p627_p4  ;;  %s1009_s27 = smov (%p32_p6, %s30_s27), 0 }
   0xd   : > { %s166_s9 = sshll.u32 %s875_s8, 4  ;;  %s876_s10 = smov [#allocation10]   ;;  %s167_s9 = int_to_ptr.vmem [resolvable:$true] %s166_s9 }
   0xe   : > { %633 = dma.hbm_to_vmem [thread:$0]  (!%p942_p5), %s177_s20, 64, %s179_s25, [#allocation9]  }
   0xf   : > { %630 = dma.hbm_to_vmem [thread:$0]  (!%p942_p5), %s165_s30, 64, %s167_s9, [#allocation6]  }
  0x10   : > { %s189_s11 = sshll.u32 %s876_s10, 4  ;;  %s877_s12 = smov 64   ;;  %s190_s11 = int_to_ptr.vmem [resolvable:$true] %s189_s11 }
  0x11   : > { %s878_s13 = smov 4   ;;  %s201_s19 = sshll.u32 %s1001_s3, 4  ;;  %s202_s19 = int_to_ptr.hbm [resolvable:$true] %s201_s19 }
  0x12   : > { %636 = dma.hbm_to_vmem [thread:$0]  (!%p942_p5), %s188_s7, 128, %s190_s11, [#allocation9], %s877_s12, %s877_s12, %s878_s13  }
  0x13   : > { %s879_s20 = smov [#allocation11]   ;;  %219 = sbr.rel (%p934_p3) target bundleno = 881 (0x371), region = 36 }
  0x14   : > { %s203_s24 = sshll.u32 %s879_s20, 4  ;;  %s204_s24 = int_to_ptr.vmem [resolvable:$true] %s203_s24 }
  0x15   : > { %639 = dma.hbm_to_vmem [thread:$0]  (!%p942_p5), %s202_s19, 1024, %s204_s24, [#allocation12], %s877_s12, %s877_s12, %s878_s13  }
  0x18   : > { %847 = dma.done.wait (%p930_p2), [#allocation6], 64  }
  0x19   : > { %849 = vsyncadd (%p930_p2), [#allocation6], 4294967232 }
  0x1a   : > { %851 = dma.done.wait (%p930_p2), [#allocation9], 192  }
  0x1b   : > { %853 = vsyncadd (%p930_p2), [#allocation9], 4294967104 }
  0x1c   : > { %855 = dma.done.wait (%p930_p2), [#allocation12], 1024  }
  0x1d   : > { %857 = vsyncadd (%p930_p2), [#allocation12], 4294966272  ;;  %p252_p7 = scmp.eq.s32.totalorder %s864_s15, 0 }
  0x1e   : > { %v597_v0 = vld [vmem:[#allocation10] sm:$0xff] (%p252_p7)  ;;  %v258_v1 = vld [vmem:[#allocation8] sm:$0xf] (%p252_p7)  ;;  %vm267_vm0 = vcmask (%p252_p7), 130048  }
  0x1f   : > { %257 = sbr.rel (!%p252_p7) target bundleno = 168 (0xa8), region = 56  ;;  %278 = vmatpush.bf16.msra.mxu0 (%p252_p7), %v597_v0 }
  0x22   : > { %554 = vmatmul.msk.bf16.vlgmr.msra.gmra.mxu0 (%p252_p7), %vm267_vm0, %v258_v1 }
  0x9f   : > { %v280_v2 = vpop.f32.mrf.mxu0 }
  0xa0   : > { %v284_v3 = vpack.c.bf16 %v280_v2, %v280_v2 }
  0xa2   : > { %285 = vst [vmem:[#allocation2] sm:$0xf] %v284_v3 }
  0xa7   : > { %v282_v4 = vpop.f32.mrf.mxu0 }
  0xa8 PF: > { %p555_p8 = scmp.ne.s32.totalorder %s864_s15, 0 }
  0xaa   : > { %288 = sbr.rel (%p555_p8) target bundleno = 314 (0x13a), region = 60 }
  0xaf   : > { %v290_v5 = vld [vmem:[#allocation2] sm:$0xf]  ;;  %vm295_vm1 = vcmask 1043456   ;;  %v289_v7 = vld [vmem:[#allocation5] sm:$0xf]  ;;  %vm291_vm2 = vcmask 64512  }
  0xb0   : > { %v297_v6 = vsel %vm295_vm1, %v290_v5, 0  ;;  %v880_v8 = vmov 0.0  }
  0xb1   : > { %306 = vmatpush.bf16.msra.mxu0 %v297_v6  ;;  %316 = vst [vmem:[#allocation13] sm:$0xff] %v880_v8 }
  0xb4   : > { %556 = vmatmul.msk.bf16.vlgmr.msra.gmra.mxu0 %vm291_vm2, %v289_v7 }
 0x131   : > { %v308_v9 = vpop.f32.mrf.mxu0 }
 0x132   : > { %v313_v10 = vmax.f32 %v308_v9, 0.0 }
 0x134   : > { %315 = vst [vmem:[#allocation3] sm:$0xff] %v313_v10 }
 0x139   : > { %v310_v11 = vpop.f32.mrf.mxu0 }
 0x13a PF: > { %p317_p9 = scmp.eq.s32.totalorder %s864_s15, 1 }
 0x13b   : > { %v606_v12 = vld [vmem:[#allocation11 + $0x38] sm:$0xff] (%p317_p9)  ;;  %v605_v13 = vld [vmem:[#allocation11 + $0x30] sm:$0xff] (%p317_p9)  ;;  %v604_v14 = vld [vmem:[#allocation11 + $0x28] sm:$0xff] (%p317_p9) }
 0x13c   : > { %321 = sbr.rel (!%p317_p9) target bundleno = 481 (0x1e1), region = 64  ;;  %388 = vmatpush.bf16.msra.mxu0 (%p317_p9), %v606_v12  ;;  %v603_v15 = vld [vmem:[#allocation11 + $0x20] sm:$0xff] (%p317_p9)  ;;  %v602_v16 = vld [vmem:[#allocation11 + $0x18] sm:$0xff] (%p317_p9)  ;;  %v601_v17 = vld [vmem:[#allocation11 + $0x10] sm:$0xff] (%p317_p9) }
 0x13d   : > { %v600_v18 = vld [vmem:[#allocation11 + $0x8] sm:$0xff] (%p317_p9)  ;;  %v599_v19 = vld [vmem:[#allocation11] sm:$0xff] (%p317_p9) }
 0x13e   : > { %v322_v20 = vld [vmem:[#allocation3] sm:$0xff] (%p317_p9) }
 0x13f   : > { %v323_v21 = vpack.c.bf16 (%p317_p9), %v322_v20, %v322_v20 }
 0x140   : > { %389 = vmatpush.bf16.msra.mxu0 (%p317_p9), %v605_v13 }
 0x144   : > { %390 = vmatpush.bf16.msra.mxu0 %v604_v14 }
 0x148   : > { %391 = vmatpush.bf16.msra.mxu0 %v603_v15 }
 0x14c   : > { %392 = vmatpush.bf16.msra.mxu0 %v602_v16 }
 0x150   : > { %393 = vmatpush.bf16.msra.mxu0 %v601_v17 }
 0x154   : > { %394 = vmatpush.bf16.msra.mxu0 %v600_v18 }
 0x158   : > { %395 = vmatpush.bf16.msra.mxu0 %v599_v19 }
 0x15b   : > { %396 = vmatmul.bf16.vlgmr.msra.gmra.mxu0 %v323_v21 }
 0x1d8   : > { %v397_v22 = vpop.f32.mrf.mxu0 }
 0x1d9   : > { %v401_v23 = vpack.c.bf16 %v397_v22, %v397_v22 }
 0x1db   : > { %402 = vst [vmem:[#allocation4] sm:$0xf] %v401_v23 }
 0x1e0   : > { %v399_v24 = vpop.f32.mrf.mxu0 }
 0x1e1 PF: > { %p590_p10 = scmp.ne.s32.totalorder %s864_s15, 1 }
 0x1e3   : > { %405 = sbr.rel (%p590_p10) target bundleno = 875 (0x36b), region = 68 }
 0x1e8   : > { %v407_v25 = vld [vmem:[#allocation4] sm:$0xf]  ;;  %vm412_vm3 = vcmask 1043456   ;;  %v406_v27 = vld [vmem:[#allocation5] sm:$0xf]  ;;  %vm408_vm4 = vcmask 64512   ;;  %v429_v28 = vlaneseq }
 0x1e9   : > { %v414_v26 = vsel %vm412_vm3, %v407_v25, 0 }
 0x1ea   : > { %423 = vmatpush.bf16.msra.mxu0 %v414_v26  ;;  %v430_v29 = vand.u32 127, %v429_v28 }
 0x1ec   : > { %vm431_vm5 = vcmp.lt.s32.totalorder %v430_v29, 8 }
 0x1ed   : > { %591 = vmatmul.msk.bf16.vlgmr.msra.gmra.mxu0 %vm408_vm4, %v406_v27 }
 0x26a   : > { %v425_v30 = vpop.f32.mrf.mxu0 }
 0x26b   : > { %v432_v31 = vsel %vm431_vm5, %v425_v30, -inf }
 0x26c   : > { %433 = vmax.xlane.f32.xlu0 %v432_v31 }
 0x272   : > { %v427_v32 = vpop.f32.mrf.mxu0 }
 0x2df   : > { %v434_v33 = vpop.xlane.xlu0 %433 }
 0x2e0   : > { %v435_v34 = vsub.f32 %v432_v31, %v434_v33 }
 0x2e2   : > { %v436_v35 = vmul.f32 1.442695, %v435_v34 }
 0x2e4   : > { %682 = vpow2.f32 %v436_v35 }
 0x2ea   : > { %v683_v36 = vpop.eup %682 }
 0x2eb   : > { %438 = vadd.xlane.f32.xlu0 %v683_v36 }
 0x35e   : > { %v439_v37 = vpop.xlane.xlu0 %438 }
 0x35f   : > { %684 = vlog2.f32 %v439_v37 }
 0x365   : > { %v685_v38 = vpop.eup %684 }
 0x366   : > { %v441_v39 = vmul.f32 0.6931472, %v685_v38 }
 0x368   : > { %v442_v40 = vsub.f32 %v435_v34, %v441_v39 }
 0x36a   : > { %443 = vst [vmem:[#allocation13] sm:$0xff] %v442_v40 }
 0x36b PF: > { %p648_p11 = scmp.eq.s32.totalorder %s538_s21, 1  ;;  %s454_s23 = sshll.u32 %s1002_s4, 4  ;;  %s455_s23 = int_to_ptr.hbm [resolvable:$true] %s454_s23 }
 0x36c   : > { %s881_s25 = smov [#allocation13]  }
 0x36d   : > { %s452_s26 = sshll.u32 %s881_s25, 4  ;;  %s453_s26 = int_to_ptr.vmem [resolvable:$true] %s452_s26 }
 0x36e   : > { %624 = dma.vmem_to_hbm [thread:$0]  (%p648_p11), %s453_s26, 128, %s455_s23, [#allocation7]  }
 0x36f   : > { %859 = dma.done.wait (%p648_p11), [#allocation7], 128  }
 0x370   : > { %861 = vsyncadd (%p648_p11), [#allocation7], 4294967168 }
 0x371 PF: > { %s18_s17 = sadd.s32 1, %s872_s17   ;;  %s1006_s15 = smov %s868_s16 }
 0x372   : > { %p15_p12 = scmp.ge.s32.totalorder %s18_s17, 4   ;;  %s1007_s16 = smov %s1009_s27 }
 0x374   :  { %17 = sbr.rel (!%p15_p12) target bundleno = 5 (0x5), region = 96 }
 0x379   :  { %468 = vsyncpa [#allocation6], 1 }
 0x37a   :  { %470 = vsyncpa [#allocation6 + $0x1], 1 }
 0x37b   :  { %471 = vsyncpa [#allocation9], 1 }
 0x37c   :  { %472 = vsyncpa [#allocation12], 1 }
 0x37d   :  { %473 = vsyncpa [#allocation7], 1 }
 0x37e   :  { %475 = vsyncpa [#allocation7 + $0x1], 1 }

</bundles_post_ra>
